<compile_context>
chip_gen: v7x
topology: tpu7x:2x2x1
jax: 0.10.0
libtpu: 0.0.40
codegen_flags: <defaults>
</compile_context>

<pallas_src>
import functools

import jax
import jax.numpy as jnp
from jax.experimental import pallas as pl
from jax.experimental.pallas import tpu as pltpu


# ----------------------------------------------------------------------------
# Kernel
# ----------------------------------------------------------------------------
def _double_conv_kernel(x_ref, w1_ref, s1_ref, w2_ref, s2_ref, o_ref,
                        y_ref, col1_ref, col2_ref, *, H, W):
    # x_ref:    (1, Cin, PF)       zero-padded input, flattened (H+2)*(W+2)+2
    # w1_ref:   (Cmid, 9*Cin)      conv1 weight (BN scale folded in)
    # s1_ref:   (Cmid, 1)  f32     conv1 bias + BN shift
    # w2_ref:   (Cout, 9*Cmid)     conv2 weight (BN scale folded in)
    # s2_ref:   (Cout, 1)  f32     conv2 bias + BN shift
    # o_ref:    (1, Cout, H*(W+2)) f32 flat conv2 output (2 junk lanes per row)
    # y_ref:    (Cmid, PF)         scratch: padded conv1 output = conv2 input
    # col1/2:   (9*C, H*(W+2))     im2col scratch (single-matmul RHS)
    Wp = W + 2
    L = H * Wp

    def conv_bn_relu(xv, col_ref, w_ref, s_ref):
        c = xv.shape[0]
        # im2col: tap (kh, kw) of the 3x3 window is a pure lane shift of the
        # flat padded input by kh*(W+2)+kw.  One copy per tap, no relayout.
        for kh in range(3):
            for kw in range(3):
                t = kh * 3 + kw
                s = kh * Wp + kw
                col_ref[t * c:(t + 1) * c, :] = xv[:, s:s + L]
        # Single MXU matmul, K = 9*c, f32 accumulation; fused BN shift + ReLU.
        acc = jnp.dot(w_ref[...], col_ref[...],
                      preferred_element_type=jnp.float32)       # (cout, L) f32
        return jnp.maximum(acc + s_ref[...], 0.0)

    # --- conv1 -> BN -> ReLU, result placed into the padded VMEM scratch ----
    y1 = conv_bn_relu(x_ref[0], col1_ref, w1_ref, s1_ref)
    # Lanes with (p mod (W+2)) >= W are not real pixels; zero them so that,
    # once shifted into place below, they become conv2's left/right padding.
    lane = jax.lax.broadcasted_iota(jnp.int32, y1.shape, 1)
    y1 = jnp.where(lane % Wp < W, y1, 0.0)
    y_ref[...] = jnp.zeros_like(y_ref)                # top/bottom/edge padding
    y_ref[:, Wp + 1:Wp + 1 + L] = y1.astype(y_ref.dtype)

    # --- conv2 -> BN -> ReLU -------------------------------------------------
    y2 = conv_bn_relu(y_ref[...], col2_ref, w2_ref, s2_ref)
    o_ref[0] = y2.astype(o_ref.dtype)


# ----------------------------------------------------------------------------
# Wrapper
# ----------------------------------------------------------------------------
def _fold_bn(p, eps=1e-5):
    """Fold eval-mode BatchNorm (+ conv bias) into the conv weight / a shift."""
    scale = p["gamma"] / jnp.sqrt(p["var"] + eps)                 # (Cout,)
    w = p["w"] * scale[:, None, None, None]                       # OIHW, scaled
    shift = p["beta"] + (p["b"] - p["mean"]) * scale              # (Cout,)
    cout, cin = w.shape[0], w.shape[1]
    # (O,I,3,3) -> (O,kh,kw,I) -> (O, 9*I); column index = (kh*3+kw)*I + i,
    # matching the tap-major / channel-minor im2col row order in the kernel.
    w_mat = jnp.transpose(w, (0, 2, 3, 1)).reshape(cout, 9 * cin)
    return w_mat.astype(jnp.float32), shift.reshape(cout, 1).astype(jnp.float32)


def double_conv_forward(x_nchw, params, *, compute_dtype=jnp.bfloat16):
    """Fused (conv3x3 -> BN(eval) -> ReLU) x 2.  NCHW in, NCHW out."""
    N, Cin, H, W = x_nchw.shape
    Wp = W + 2
    L = H * Wp                     # flat spatial extent of each conv output
    PF = (H + 2) * Wp + 2          # flat padded input (+2 tail keeps every tap slice in-bounds)

    w1, s1 = _fold_bn(params[0])
    w2, s2 = _fold_bn(params[1])
    Cmid, Cout = w1.shape[0], w2.shape[0]

    # Zero-pad conv1's input spatially, flatten (H+2, W+2) onto the lane dim.
    x_flat = jnp.pad(x_nchw, ((0, 0), (0, 0), (1, 1), (1, 1)))
    x_flat = x_flat.reshape(N, Cin, (H + 2) * Wp)
    x_flat = jnp.pad(x_flat, ((0, 0), (0, 0), (0, 2))).astype(compute_dtype)

    w1 = w1.astype(compute_dtype)
    w2 = w2.astype(compute_dtype)

    kernel = functools.partial(_double_conv_kernel, H=H, W=W)
    out_flat = pl.pallas_call(
        kernel,
        out_shape=jax.ShapeDtypeStruct((N, Cout, L), jnp.float32),
        grid_spec=pltpu.PrefetchScalarGridSpec(
            num_scalar_prefetch=0,
            grid=(N,),
            in_specs=[
                pl.BlockSpec((1, Cin, PF), lambda n: (n, 0, 0)),
                pl.BlockSpec((Cmid, 9 * Cin), lambda n: (0, 0)),
                pl.BlockSpec((Cmid, 1), lambda n: (0, 0)),
                pl.BlockSpec((Cout, 9 * Cmid), lambda n: (0, 0)),
                pl.BlockSpec((Cout, 1), lambda n: (0, 0)),
            ],
            out_specs=pl.BlockSpec((1, Cout, L), lambda n: (n, 0, 0)),
            scratch_shapes=[
                pltpu.VMEM((Cmid, PF), compute_dtype),      # padded conv1 output
                pltpu.VMEM((9 * Cin, L), compute_dtype),    # im2col, conv1
                pltpu.VMEM((9 * Cmid, L), compute_dtype),   # im2col, conv2
            ],
        ),
        compiler_params=pltpu.CompilerParams(
            dimension_semantics=("parallel",),
            vmem_limit_bytes=32 * 1024 * 1024,
        ),
    )(x_flat, w1, s1, w2, s2)

    # Drop the 2 junk lanes per output row: (N, Cout, H*(W+2)) -> (N, Cout, H, W).
    return out_flat.reshape(N, Cout, H, Wp)[:, :, :, :W]


def inconv_forward(x_nchw, params, *, compute_dtype=jnp.bfloat16):
    """inconv forward = double_conv forward (NCHW in/out, like PyTorch)."""
    return double_conv_forward(x_nchw, params, compute_dtype=compute_dtype)


# ----------------------------------------------------------------------------
# Reference implementation (plain JAX, NCHW, f32) for correctness checking.
# ----------------------------------------------------------------------------
def _ref_block(x_nchw, w_oihw, b, gamma, beta, mean, var, eps=1e-5):
    y = jax.lax.conv_general_dilated(
        x_nchw, w_oihw, window_strides=(1, 1), padding="SAME",
        dimension_numbers=("NCHW", "OIHW", "NCHW"))
    y = y + b[None, :, None, None]
    inv = gamma / jnp.sqrt(var + eps)
    y = (y - mean[None, :, None, None]) * inv[None, :, None, None] \
        + beta[None, :, None, None]
    return jnp.maximum(y, 0.0)


def _ref_inconv(x_nchw, params):
    x = x_nchw
    for p in params:
        x = _ref_block(x, p["w"], p["b"], p["gamma"], p["beta"],
                       p["mean"], p["var"])
    return x


def _make_params(key, in_ch, out_ch):
    """Deterministic synthetic parameters for the two conv/BN blocks."""
    ks = jax.random.split(key, 12)
    def block(k0, k1, k2, k3, k4, k5, cin, cout):
        return {
            "w": 0.1 * jax.random.normal(k0, (cout, cin, 3, 3), jnp.float32),
            "b": 0.1 * jax.random.normal(k1, (cout,), jnp.float32),
            "gamma": 1.0 + 0.1 * jax.random.normal(k2, (cout,), jnp.float32),
            "beta": 0.1 * jax.random.normal(k3, (cout,), jnp.float32),
            "mean": 0.1 * jax.random.normal(k4, (cout,), jnp.float32),
            "var": jnp.abs(1.0 + 0.1 * jax.random.normal(k5, (cout,), jnp.float32)),
        }
    p1 = block(*ks[0:6], in_ch, out_ch)
    p2 = block(*ks[6:12], out_ch, out_ch)
    return [p1, p2]


if __name__ == "__main__":
    key = jax.random.PRNGKey(0)
    k_x, k_p = jax.random.split(key)

    N, Cin, Cout, H, W = 2, 4, 8, 16, 16
    x = jax.random.normal(k_x, (N, Cin, H, W), jnp.float32)   # NCHW like PyTorch
    params = _make_params(k_p, Cin, Cout)

    ref = jax.block_until_ready(_ref_inconv(x, params))

    # f32 MXU path: tight correctness check of the kernel math.
    out_f32 = jax.block_until_ready(
        inconv_forward(x, params, compute_dtype=jnp.float32))
    assert out_f32.shape == (N, Cout, H, W), out_f32.shape
    assert jnp.allclose(out_f32, ref, atol=1e-3, rtol=1e-3), \
        float(jnp.max(jnp.abs(out_f32 - ref)))

    # bf16 MXU path (fast production config): looser tolerance vs f32 reference.
    out_bf16 = jax.block_until_ready(
        inconv_forward(x, params, compute_dtype=jnp.bfloat16))
    assert out_bf16.shape == (N, Cout, H, W), out_bf16.shape
    assert jnp.allclose(out_bf16, ref, atol=3e-2, rtol=3e-2), \
        float(jnp.max(jnp.abs(out_bf16 - ref)))

    print("KERNEL_OK")
</pallas_src>

<mosaic_0001>
module attributes {stable_mosaic.version = 11 : i64} {
  func.func @_double_conv_kernel(%arg0: i32, %arg1: memref<1x4x326xf32, #tpu.memory_space<vmem>>, %arg2: memref<8x36xf32, #tpu.memory_space<vmem>>, %arg3: memref<8x1xf32, #tpu.memory_space<vmem>>, %arg4: memref<8x72xf32, #tpu.memory_space<vmem>>, %arg5: memref<8x1xf32, #tpu.memory_space<vmem>>, %arg6: memref<1x8x288xf32, #tpu.memory_space<vmem>>, %arg7: memref<8x326xf32, #tpu.memory_space<vmem>>, %arg8: memref<36x288xf32, #tpu.memory_space<vmem>>, %arg9: memref<72x288xf32, #tpu.memory_space<vmem>>) attributes {dimension_semantics = [#tpu.dimension_semantics<parallel>], iteration_bounds = array<i64: 2>, scalar_prefetch = 0 : i64, scratch_operands = 3 : i64, tpu.core_type = #tpu.core_type<tc>, window_params = [{transform_indices = @transform_0, window_bounds = array<i64: 1, 4, 326>}, {pipeline_mode = #tpu.pipeline_mode<synchronous>, transform_indices = @transform_1, window_bounds = array<i64: 8, 36>}, {pipeline_mode = #tpu.pipeline_mode<synchronous>, transform_indices = @transform_2, window_bounds = array<i64: 8, 1>}, {pipeline_mode = #tpu.pipeline_mode<synchronous>, transform_indices = @transform_3, window_bounds = array<i64: 8, 72>}, {pipeline_mode = #tpu.pipeline_mode<synchronous>, transform_indices = @transform_4, window_bounds = array<i64: 8, 1>}, {transform_indices = @transform_5, window_bounds = array<i64: 1, 8, 288>}]} {
    %c0 = arith.constant 0 : index
    %c0_0 = arith.constant 0 : index
    %c0_1 = arith.constant 0 : index
    %0 = vector.load %arg1[%c0, %c0_0, %c0_1] : memref<1x4x326xf32, #tpu.memory_space<vmem>>, vector<1x4x326xf32>
    %1 = vector.shape_cast %0 : vector<1x4x326xf32> to vector<4x326xf32>
    %2 = vector.extract_strided_slice %1 {offsets = [0, 0], sizes = [4, 288], strides = [1, 1]} : vector<4x326xf32> to vector<4x288xf32>
    %c0_2 = arith.constant 0 : index
    %c0_3 = arith.constant 0 : index
    %3 = vector.load %arg8[%c0_2, %c0_3] : memref<36x288xf32, #tpu.memory_space<vmem>>, vector<4x288xf32>
    tpu.vector_store %arg8[%c0_2, %c0_3], %2 {strides = array<i32>} : memref<36x288xf32, #tpu.memory_space<vmem>>, vector<4x288xf32>,
    %4 = vector.extract_strided_slice %1 {offsets = [0, 1], sizes = [4, 288], strides = [1, 1]} : vector<4x326xf32> to vector<4x288xf32>
    %c4 = arith.constant 4 : index
    %c0_4 = arith.constant 0 : index
    %5 = vector.load %arg8[%c4, %c0_4] : memref<36x288xf32, #tpu.memory_space<vmem>>, vector<4x288xf32>
    tpu.vector_store %arg8[%c4, %c0_4], %4 {strides = array<i32>} : memref<36x288xf32, #tpu.memory_space<vmem>>, vector<4x288xf32>,
    %6 = vector.extract_strided_slice %1 {offsets = [0, 2], sizes = [4, 288], strides = [1, 1]} : vector<4x326xf32> to vector<4x288xf32>
    %c8 = arith.constant 8 : index
    %c0_5 = arith.constant 0 : index
    %7 = vector.load %arg8[%c8, %c0_5] : memref<36x288xf32, #tpu.memory_space<vmem>>, vector<4x288xf32>
    tpu.vector_store %arg8[%c8, %c0_5], %6 {strides = array<i32>} : memref<36x288xf32, #tpu.memory_space<vmem>>, vector<4x288xf32>,
    %8 = vector.extract_strided_slice %1 {offsets = [0, 18], sizes = [4, 288], strides = [1, 1]} : vector<4x326xf32> to vector<4x288xf32>
    %c12 = arith.constant 12 : index
    %c0_6 = arith.constant 0 : index
    %9 = vector.load %arg8[%c12, %c0_6] : memref<36x288xf32, #tpu.memory_space<vmem>>, vector<4x288xf32>
    tpu.vector_store %arg8[%c12, %c0_6], %8 {strides = array<i32>} : memref<36x288xf32, #tpu.memory_space<vmem>>, vector<4x288xf32>,
    %10 = vector.extract_strided_slice %1 {offsets = [0, 19], sizes = [4, 288], strides = [1, 1]} : vector<4x326xf32> to vector<4x288xf32>
    %c16 = arith.constant 16 : index
    %c0_7 = arith.constant 0 : index
    %11 = vector.load %arg8[%c16, %c0_7] : memref<36x288xf32, #tpu.memory_space<vmem>>, vector<4x288xf32>
    tpu.vector_store %arg8[%c16, %c0_7], %10 {strides = array<i32>} : memref<36x288xf32, #tpu.memory_space<vmem>>, vector<4x288xf32>,
    %12 = vector.extract_strided_slice %1 {offsets = [0, 20], sizes = [4, 288], strides = [1, 1]} : vector<4x326xf32> to vector<4x288xf32>
    %c20 = arith.constant 20 : index
    %c0_8 = arith.constant 0 : index
    %13 = vector.load %arg8[%c20, %c0_8] : memref<36x288xf32, #tpu.memory_space<vmem>>, vector<4x288xf32>
    tpu.vector_store %arg8[%c20, %c0_8], %12 {strides = array<i32>} : memref<36x288xf32, #tpu.memory_space<vmem>>, vector<4x288xf32>,
    %14 = vector.extract_strided_slice %1 {offsets = [0, 36], sizes = [4, 288], strides = [1, 1]} : vector<4x326xf32> to vector<4x288xf32>
    %c24 = arith.constant 24 : index
    %c0_9 = arith.constant 0 : index
    %15 = vector.load %arg8[%c24, %c0_9] : memref<36x288xf32, #tpu.memory_space<vmem>>, vector<4x288xf32>
    tpu.vector_store %arg8[%c24, %c0_9], %14 {strides = array<i32>} : memref<36x288xf32, #tpu.memory_space<vmem>>, vector<4x288xf32>,
    %16 = vector.extract_strided_slice %1 {offsets = [0, 37], sizes = [4, 288], strides = [1, 1]} : vector<4x326xf32> to vector<4x288xf32>
    %c28 = arith.constant 28 : index
    %c0_10 = arith.constant 0 : index
    %17 = vector.load %arg8[%c28, %c0_10] : memref<36x288xf32, #tpu.memory_space<vmem>>, vector<4x288xf32>
    tpu.vector_store %arg8[%c28, %c0_10], %16 {strides = array<i32>} : memref<36x288xf32, #tpu.memory_space<vmem>>, vector<4x288xf32>,
    %18 = vector.extract_strided_slice %1 {offsets = [0, 38], sizes = [4, 288], strides = [1, 1]} : vector<4x326xf32> to vector<4x288xf32>
    %c32 = arith.constant 32 : index
    %c0_11 = arith.constant 0 : index
    %19 = vector.load %arg8[%c32, %c0_11] : memref<36x288xf32, #tpu.memory_space<vmem>>, vector<4x288xf32>
    tpu.vector_store %arg8[%c32, %c0_11], %18 {strides = array<i32>} : memref<36x288xf32, #tpu.memory_space<vmem>>, vector<4x288xf32>,
    %c0_12 = arith.constant 0 : index
    %c0_13 = arith.constant 0 : index
    %20 = vector.load %arg2[%c0_12, %c0_13] : memref<8x36xf32, #tpu.memory_space<vmem>>, vector<8x36xf32>
    %c0_14 = arith.constant 0 : index
    %c0_15 = arith.constant 0 : index
    %21 = vector.load %arg8[%c0_14, %c0_15] : memref<36x288xf32, #tpu.memory_space<vmem>>, vector<36x288xf32>
    %cst = arith.constant dense<0.000000e+00> : vector<8x288xf32>
    %22 = tpu.matmul %20, %21, %cst {dimension_numbers = #tpu.dot_dimension_numbers<[1], [0], [0], [1], [0, 0, 1, 1], [], []>} : vector<8x36xf32>, vector<36x288xf32>, vector<8x288xf32> -> vector<8x288xf32>
    %c0_16 = arith.constant 0 : index
    %c0_17 = arith.constant 0 : index
    %23 = vector.load %arg3[%c0_16, %c0_17] : memref<8x1xf32, #tpu.memory_space<vmem>>, vector<8x1xf32>
    %24 = vector.broadcast %23 : vector<8x1xf32> to vector<8x288xf32>
    %25 = arith.addf %22, %24 : vector<8x288xf32>
    %cst_18 = arith.constant 0.000000e+00 : f32
    %26 = vector.broadcast %cst_18 : f32 to vector<8x288xf32>
    %27 = arith.maximumf %25, %26 : vector<8x288xf32>
    %28 = tpu.iota {dimensions = array<i32: 1>} : vector<8x288xi32>
    %c18_i32 = arith.constant 18 : i32
    %c0_i32 = arith.constant 0 : i32
    %29 = arith.cmpi eq, %c18_i32, %c0_i32 : i32
    %c1_i32 = arith.constant 1 : i32
    %30 = arith.select %29, %c1_i32, %c18_i32 : i32
    %31 = vector.broadcast %30 : i32 to vector<8x288xi32>
    %32 = arith.remsi %28, %31 : vector<8x288xi32>
    %c0_i32_19 = arith.constant 0 : i32
    %33 = vector.broadcast %c0_i32_19 : i32 to vector<8x288xi32>
    %34 = arith.cmpi ne, %32, %33 : vector<8x288xi32>
    %c0_i32_20 = arith.constant 0 : i32
    %35 = vector.broadcast %c0_i32_20 : i32 to vector<8x288xi32>
    %36 = arith.cmpi slt, %32, %35 : vector<8x288xi32>
    %c0_i32_21 = arith.constant 0 : i32
    %37 = arith.cmpi slt, %30, %c0_i32_21 : i32
    %38 = vector.broadcast %37 : i1 to vector<8x288xi1>
    %39 = vector.broadcast %38 : vector<8x288xi1> to vector<8x288xi1>
    %40 = arith.xori %36, %39 : vector<8x288xi1>
    %41 = arith.andi %40, %34 : vector<8x288xi1>
    %42 = vector.broadcast %30 : i32 to vector<8x288xi32>
    %43 = arith.addi %32, %42 : vector<8x288xi32>
    %44 = arith.select %41, %43, %32 : vector<8x288xi1>, vector<8x288xi32>
    %c16_i32 = arith.constant 16 : i32
    %45 = vector.broadcast %c16_i32 : i32 to vector<8x288xi32>
    %46 = arith.cmpi slt, %44, %45 : vector<8x288xi32>
    %cst_22 = arith.constant 0.000000e+00 : f32
    %47 = vector.broadcast %cst_22 : f32 to vector<8x288xf32>
    %48 = arith.select %46, %27, %47 : vector<8x288xi1>, vector<8x288xf32>
    %cst_23 = arith.constant 0.000000e+00 : f32
    %49 = vector.broadcast %cst_23 : f32 to vector<8x326xf32>
    %c0_24 = arith.constant 0 : index
    %c0_25 = arith.constant 0 : index
    %50 = vector.load %arg7[%c0_24, %c0_25] : memref<8x326xf32, #tpu.memory_space<vmem>>, vector<8x326xf32>
    tpu.vector_store %arg7[%c0_24, %c0_25], %49 {strides = array<i32>} : memref<8x326xf32, #tpu.memory_space<vmem>>, vector<8x326xf32>,
    %c0_26 = arith.constant 0 : index
    %c19 = arith.constant 19 : index
    %51 = vector.load %arg7[%c0_26, %c19] : memref<8x326xf32, #tpu.memory_space<vmem>>, vector<8x288xf32>
    tpu.vector_store %arg7[%c0_26, %c19], %48 {strides = array<i32>} : memref<8x326xf32, #tpu.memory_space<vmem>>, vector<8x288xf32>,
    %c0_27 = arith.constant 0 : index
    %c0_28 = arith.constant 0 : index
    %52 = vector.load %arg7[%c0_27, %c0_28] : memref<8x326xf32, #tpu.memory_space<vmem>>, vector<8x326xf32>
    %53 = vector.extract_strided_slice %52 {offsets = [0, 0], sizes = [8, 288], strides = [1, 1]} : vector<8x326xf32> to vector<8x288xf32>
    %c0_29 = arith.constant 0 : index
    %c0_30 = arith.constant 0 : index
    %54 = vector.load %arg9[%c0_29, %c0_30] : memref<72x288xf32, #tpu.memory_space<vmem>>, vector<8x288xf32>
    tpu.vector_store %arg9[%c0_29, %c0_30], %53 {strides = array<i32>} : memref<72x288xf32, #tpu.memory_space<vmem>>, vector<8x288xf32>,
    %55 = vector.extract_strided_slice %52 {offsets = [0, 1], sizes = [8, 288], strides = [1, 1]} : vector<8x326xf32> to vector<8x288xf32>
    %c8_31 = arith.constant 8 : index
    %c0_32 = arith.constant 0 : index
    %56 = vector.load %arg9[%c8_31, %c0_32] : memref<72x288xf32, #tpu.memory_space<vmem>>, vector<8x288xf32>
    tpu.vector_store %arg9[%c8_31, %c0_32], %55 {strides = array<i32>} : memref<72x288xf32, #tpu.memory_space<vmem>>, vector<8x288xf32>,
    %57 = vector.extract_strided_slice %52 {offsets = [0, 2], sizes = [8, 288], strides = [1, 1]} : vector<8x326xf32> to vector<8x288xf32>
    %c16_33 = arith.constant 16 : index
    %c0_34 = arith.constant 0 : index
    %58 = vector.load %arg9[%c16_33, %c0_34] : memref<72x288xf32, #tpu.memory_space<vmem>>, vector<8x288xf32>
    tpu.vector_store %arg9[%c16_33, %c0_34], %57 {strides = array<i32>} : memref<72x288xf32, #tpu.memory_space<vmem>>, vector<8x288xf32>,
    %59 = vector.extract_strided_slice %52 {offsets = [0, 18], sizes = [8, 288], strides = [1, 1]} : vector<8x326xf32> to vector<8x288xf32>
    %c24_35 = arith.constant 24 : index
    %c0_36 = arith.constant 0 : index
    %60 = vector.load %arg9[%c24_35, %c0_36] : memref<72x288xf32, #tpu.memory_space<vmem>>, vector<8x288xf32>
    tpu.vector_store %arg9[%c24_35, %c0_36], %59 {strides = array<i32>} : memref<72x288xf32, #tpu.memory_space<vmem>>, vector<8x288xf32>,
    %61 = vector.extract_strided_slice %52 {offsets = [0, 19], sizes = [8, 288], strides = [1, 1]} : vector<8x326xf32> to vector<8x288xf32>
    %c32_37 = arith.constant 32 : index
    %c0_38 = arith.constant 0 : index
    %62 = vector.load %arg9[%c32_37, %c0_38] : memref<72x288xf32, #tpu.memory_space<vmem>>, vector<8x288xf32>
    tpu.vector_store %arg9[%c32_37, %c0_38], %61 {strides = array<i32>} : memref<72x288xf32, #tpu.memory_space<vmem>>, vector<8x288xf32>,
    %63 = vector.extract_strided_slice %52 {offsets = [0, 20], sizes = [8, 288], strides = [1, 1]} : vector<8x326xf32> to vector<8x288xf32>
    %c40 = arith.constant 40 : index
    %c0_39 = arith.constant 0 : index
    %64 = vector.load %arg9[%c40, %c0_39] : memref<72x288xf32, #tpu.memory_space<vmem>>, vector<8x288xf32>
    tpu.vector_store %arg9[%c40, %c0_39], %63 {strides = array<i32>} : memref<72x288xf32, #tpu.memory_space<vmem>>, vector<8x288xf32>,
    %65 = vector.extract_strided_slice %52 {offsets = [0, 36], sizes = [8, 288], strides = [1, 1]} : vector<8x326xf32> to vector<8x288xf32>
    %c48 = arith.constant 48 : index
    %c0_40 = arith.constant 0 : index
    %66 = vector.load %arg9[%c48, %c0_40] : memref<72x288xf32, #tpu.memory_space<vmem>>, vector<8x288xf32>
    tpu.vector_store %arg9[%c48, %c0_40], %65 {strides = array<i32>} : memref<72x288xf32, #tpu.memory_space<vmem>>, vector<8x288xf32>,
    %67 = vector.extract_strided_slice %52 {offsets = [0, 37], sizes = [8, 288], strides = [1, 1]} : vector<8x326xf32> to vector<8x288xf32>
    %c56 = arith.constant 56 : index
    %c0_41 = arith.constant 0 : index
    %68 = vector.load %arg9[%c56, %c0_41] : memref<72x288xf32, #tpu.memory_space<vmem>>, vector<8x288xf32>
    tpu.vector_store %arg9[%c56, %c0_41], %67 {strides = array<i32>} : memref<72x288xf32, #tpu.memory_space<vmem>>, vector<8x288xf32>,
    %69 = vector.extract_strided_slice %52 {offsets = [0, 38], sizes = [8, 288], strides = [1, 1]} : vector<8x326xf32> to vector<8x288xf32>
    %c64 = arith.constant 64 : index
    %c0_42 = arith.constant 0 : index
    %70 = vector.load %arg9[%c64, %c0_42] : memref<72x288xf32, #tpu.memory_space<vmem>>, vector<8x288xf32>
    tpu.vector_store %arg9[%c64, %c0_42], %69 {strides = array<i32>} : memref<72x288xf32, #tpu.memory_space<vmem>>, vector<8x288xf32>,
    %c0_43 = arith.constant 0 : index
    %c0_44 = arith.constant 0 : index
    %71 = vector.load %arg4[%c0_43, %c0_44] : memref<8x72xf32, #tpu.memory_space<vmem>>, vector<8x72xf32>
    %c0_45 = arith.constant 0 : index
    %c0_46 = arith.constant 0 : index
    %72 = vector.load %arg9[%c0_45, %c0_46] : memref<72x288xf32, #tpu.memory_space<vmem>>, vector<72x288xf32>
    %cst_47 = arith.constant dense<0.000000e+00> : vector<8x288xf32>
    %73 = tpu.matmul %71, %72, %cst_47 {dimension_numbers = #tpu.dot_dimension_numbers<[1], [0], [0], [1], [0, 0, 1, 1], [], []>} : vector<8x72xf32>, vector<72x288xf32>, vector<8x288xf32> -> vector<8x288xf32>
    %c0_48 = arith.constant 0 : index
    %c0_49 = arith.constant 0 : index
    %74 = vector.load %arg5[%c0_48, %c0_49] : memref<8x1xf32, #tpu.memory_space<vmem>>, vector<8x1xf32>
    %75 = vector.broadcast %74 : vector<8x1xf32> to vector<8x288xf32>
    %76 = arith.addf %73, %75 : vector<8x288xf32>
    %cst_50 = arith.constant 0.000000e+00 : f32
    %77 = vector.broadcast %cst_50 : f32 to vector<8x288xf32>
    %78 = arith.maximumf %76, %77 : vector<8x288xf32>
    %c0_51 = arith.constant 0 : index
    %c0_52 = arith.constant 0 : index
    %c0_53 = arith.constant 0 : index
    %79 = vector.load %arg6[%c0_51, %c0_52, %c0_53] : memref<1x8x288xf32, #tpu.memory_space<vmem>>, vector<1x8x288xf32>
    %80 = vector.shape_cast %79 : vector<1x8x288xf32> to vector<8x288xf32>
    %81 = vector.shape_cast %78 : vector<8x288xf32> to vector<1x8x288xf32>
    tpu.vector_store %arg6[%c0_51, %c0_52, %c0_53], %81 {strides = array<i32>} : memref<1x8x288xf32, #tpu.memory_space<vmem>>, vector<1x8x288xf32>,
    return
  }
  func.func @transform_0(%arg0: i32) -> (i32, i32, i32) {
    %c0_i32 = arith.constant 0 : i32
    %c0_i32_0 = arith.constant 0 : i32
    %c0_i32_1 = arith.constant 0 : i32
    return %arg0, %c0_i32, %c0_i32_0 : i32, i32, i32
  }
  func.func @transform_1(%arg0: i32) -> (i32, i32) {
    %c0_i32 = arith.constant 0 : i32
    %c0_i32_0 = arith.constant 0 : i32
    %c0_i32_1 = arith.constant 0 : i32
    return %c0_i32, %c0_i32_0 : i32, i32
  }
  func.func @transform_2(%arg0: i32) -> (i32, i32) {
    %c0_i32 = arith.constant 0 : i32
    %c0_i32_0 = arith.constant 0 : i32
    %c0_i32_1 = arith.constant 0 : i32
    return %c0_i32, %c0_i32_0 : i32, i32
  }
  func.func @transform_3(%arg0: i32) -> (i32, i32) {
    %c0_i32 = arith.constant 0 : i32
    %c0_i32_0 = arith.constant 0 : i32
    %c0_i32_1 = arith.constant 0 : i32
    return %c0_i32, %c0_i32_0 : i32, i32
  }
  func.func @transform_4(%arg0: i32) -> (i32, i32) {
    %c0_i32 = arith.constant 0 : i32
    %c0_i32_0 = arith.constant 0 : i32
    %c0_i32_1 = arith.constant 0 : i32
    return %c0_i32, %c0_i32_0 : i32, i32
  }
  func.func @transform_5(%arg0: i32) -> (i32, i32, i32) {
    %c0_i32 = arith.constant 0 : i32
    %c0_i32_0 = arith.constant 0 : i32
    %c0_i32_1 = arith.constant 0 : i32
    return %arg0, %c0_i32, %c0_i32_0 : i32, i32, i32
  }
}

</mosaic_0001>

<bundles_post_ra>
// kernel: tpu_custom_call.1
= control target key start
LH: loop header
LB: loop body
LE: loop exit
PB: predicated region body
PF: predicated region fallthrough
CT: control target
= control target key end

     0   :  { %10 = vsyncpa [#allocation6], 0  ;;  %s1654_s0 = inlined_call_operand.hbm [shape: f32[2,4,326], index: 0, kind: input, shape index: {}]   ;;  %s1655_s1 = inlined_call_operand.vmem [shape: f32[8,36], index: 1, kind: input, shape index: {}]   ;;  %s1656_s2 = inlined_call_operand.vmem [shape: f32[8,1], index: 2, kind: input, shape index: {}]   ;;  %s1657_s3 = inlined_call_operand.vmem [shape: f32[8,72], index: 3, kind: input, shape index: {}]   ;;  %s1658_s4 = inlined_call_operand.vmem [shape: f32[8,1], index: 4, kind: input, shape index: {}]   ;;  %s1659_s5 = inlined_call_operand.hbm [shape: f32[2,8,288], index: 5, kind: output, shape index: {}]  }
   0x1   :  { %12 = vsyncpa [#allocation6 + $0x1], 0 }
   0x2   :  { %13 = vsyncpa [#allocation7], 0 }
   0x3   :  { %15 = vsyncpa [#allocation7 + $0x1], 0  ;;  %s1353_s18 = smov 0   ;;  %s1355_s19 = smov 0  }
   0x4   :  { %s1357_s20 = smov 0   ;;  %s1359_s21 = smov 0  }
   0x5 LB: > { %s1374_s22 = sadd.s32 4294967295, %s1306_s21   ;;  %s1028_s23 = sadd.s32 4294967294, %s1306_s21   ;;  %s1306_s21 = sphi %s1359_s21, %s1681_s21   ;;  %s1302_s20 = sphi %s1357_s20, %s1680_s20   ;;  %s1298_s19 = sphi %s1355_s19, %s1679_s19   ;;  %s1294_s18 = sphi %s1353_s18, %s1678_s18  }
   0x6   : > { %s1378_s24 = sadd.s32 1, %s1306_s21   ;;  %s28_s25 = sadd.s32 1, %s1302_s20 }
   0x7   : > { %s25_s26 = ssub.s32 %s1306_s21, %s1378_s24  ;;  %p35_p0 = scmp.ne.s32.totalorder %s1302_s20, %s1298_s19 }
   0x8   : > { %p26_p1 = scmp.eq.s32.totalorder %s25_s26, 0  ;;  %p36_p2 = scmp.eq.s32.totalorder %s1306_s21, 0 }
   0x9   : > { %p41_p3 = scmp.ne.s32.totalorder %s1298_s19, %s1294_s18  ;;  %p42_p4 = scmp.eq.s32.totalorder %s1374_s22, 0 }
   0xa   : > { %s1390_s27 = scalar_select %p26_p1, %s1302_s20, %s28_s25  }
   0xb   : > { %p37_p5 = por %p36_p2, %p35_p0  ;;  %p1392_p6 = por %p42_p4, %p41_p3 }
   0xc   : > { %p149_p7 = scmp.eq.s32.totalorder %s1374_s22, 1  ;;  %p155_p8 = scmp.eq.s32.totalorder %s1028_s23, 1 }
   0xd   : > { %p1158_p10 = scmp.lt.s32.totalorder %s1306_s21, 2  ;;  %s187_s6 = sand.u32 1, %s1302_s20  }
   0xe   : > { %p1399_p11 = por %p149_p7, %p35_p0  ;;  %p1403_p12 = por %p155_p8, %p41_p3 }
   0xf   : > { %s1136_s7 = smul.u32 192, %s1306_s21  ;;  %p1414_p13 = pnand %p1158_p10, %p37_p5 }
  0x10   : > { %s1664_s29 = scalar_select %p1399_p11, 1, 0 }
  0x11   : > { %s1665_s30 = scalar_select %p1403_p12, 1, 0 }
  0x12   : > { %s1135_s8 = smul.u32 12, %s187_s6  ;;  %s1412_s11 = scalar_lea.hbm %s1654_s0, %s1136_s7 }
  0x13   : > { %s188_s15 = scalar_lea.sflag [#allocation6], %s187_s6  ;;  %s1210_s16 = scalar_lea.hbm %s1412_s11, 192 }
  0x14   : > { %s191_s13 = scalar_lea.vmem [#allocation5], %s1135_s8  ;;  %p1211_p2 = scmp.ne.s32.totalorder %s1412_s11, %s1210_s16 }
  0x15   : > { %s199_s14 = sshll.u32 %s191_s13, 4  ;;  %p1212_p3 = pneg %p1414_p13  ;;  %s1419_s14 = int_to_ptr.vmem [resolvable:$true] %s199_s14 }
  0x16   : > { %s1215_s25 = scalar_lea.hbm %s1654_s0, 384  ;;  %p1216_p7 = scmp.lt.u32.totalorder %s1412_s11, %s1654_s0 }
  0x17   : > { %p1213_p4 = pnand %p1212_p3, %p1211_p2  ;;  %p1217_p8 = scmp.lt.u32.totalorder %s1215_s25, %s1210_s16 }
  0x18   : > { %p1219_p9 = scmp.lt.u32.totalorder %s1210_s16, %s1412_s11 }
  0x19   : > { %p1214_p5 = pneg %p1213_p4  ;;  %p1218_p10 = por %p1217_p8, %p1216_p7 }
  0x1b   : > { %p1220_p0 = por %p1219_p9, %p1218_p10 }
  0x1d   : > { %p1221_p1 = pnand %p1220_p0, %p1214_p5 }
  0x1f   : > { %1224 = shalt.err (!%p1221_p1)
}
  0x20   : > { %s1225_s6 = scalar_lea.vmem %s1419_s14, 192  ;;  %s1308_s8 = smov [#allocation5]  }
  0x21   : > { %p1226_p2 = scmp.ne.s32.totalorder %s1419_s14, %s1225_s6  ;;  %s1230_s9 = sshll.u32 %s1308_s8, 4  ;;  %s1231_s9 = int_to_ptr.vmem [resolvable:$false] %s1230_s9 }
  0x22   : > { %s1232_s10 = scalar_lea.vmem %s1231_s9, 384  ;;  %p1233_p11 = scmp.lt.s32.totalorder %s1419_s14, %s1231_s9 }
  0x23   : > { %p1228_p4 = pnand %p1226_p2, %p1212_p3  ;;  %p1234_p7 = scmp.lt.s32.totalorder %s1232_s10, %s1225_s6 }
  0x25   : > { %p1229_p12 = pneg %p1228_p4  ;;  %p1235_p8 = por %p1234_p7, %p1233_p11 }
  0x27   : > { %p1236_p9 = pnand %p1235_p8, %p1229_p12 }
  0x29   : > { %1239 = shalt.err (!%p1236_p9)
}
  0x2a   : > { %1153 = dma.hbm_to_vmem [thread:$0]  (!%p1414_p13), %s1412_s11, 192, %s1419_s14, %s188_s15  }
  0x2b   : > { %p1667_p0 = scmp.lt.s32.totalorder %s1306_s21, 3  ;;  %p1668_p1 = scmp.ge.s32.totalorder %s1306_s21, 1 }
  0x2d   : > { %p205_p3 = pnand %p1668_p1, %p1667_p0 }
  0x2e   : > { %s1452_s13 = sand.u32 (!%p205_p3), 1, %s1298_s19  }
  0x2f   : > { %208 = sbr.rel (%p205_p3) target bundleno = 966 (0x3c6), region = 40  ;;  %s211_s17 = scalar_lea.sflag (!%p205_p3), [#allocation6], %s1452_s13 }
  0x30   : > { %s1137_s16 = smul.u32 (!%p205_p3), 12, %s1452_s13 }
  0x32   : > { %s214_s23 = scalar_lea.vmem (!%p205_p3), [#allocation5], %s1137_s16 }
  0x36   : > { %1285 = dma.done.wait (%p1392_p6), %s211_s17, 192  }
  0x37   : > { %1287 = vsyncadd (%p1392_p6), %s211_s17, 4294967104  ;;  %v242_v0 = vld [vmem:[%s214_s23 + $0x8] sm:$0xf]  ;;  %v241_v1 = vld [vmem:[%s214_s23] sm:$0xff]  ;;  %vm249_vm0 = vcmask 257024   ;;  %s1309_s11 = smov 126  }
  0x38   : > { %273 = vrot.lane.b32.xlu1 %v242_v0, %s1309_s11  ;;  %s1310_s12 = smov 127   ;;  %247 = vst [vmem:[#allocation3] sm:$0xf] %v241_v1  ;;  %v245_v2 = vcombine.high %v241_v1, %v241_v1  ;;  %250 = vst.msk [vmem:[#allocation3 + $0x10] sm:$0xf] %vm249_vm0, %v242_v0  ;;  %s1311_s14 = smov 110   ;;  %v252_v3 = vcombine.low %v242_v0, %v242_v0  ;;  %v251_v5 = vcombine.low %v241_v1, %v241_v1 }
  0x39   : > { %255 = vrot.lane.b32.xlu0 %v241_v1, %s1310_s12  ;;  %v1312_v4 = vmov 0.0|0.0   ;;  %s1313_s28 = smov 109   ;;  %s1314_s15 = smov 108   ;;  %v1317_v6 = vmov 0.0   ;;  %vm1319_vm1 = vmmov 0   ;;  %v1320_v7 = vmov 0  }
  0x3a   : > { %248 = vst [vmem:[#allocation3 + $0x8] sm:$0xf] %v245_v2  ;;  %1101 = vmatprep.subr.bf16.mxu1 %v1312_v4  ;;  %s1315_s25 = smov 92   ;;  %s1316_s26 = smov 91   ;;  %612 = vst [vmem:[#allocation2] sm:$0xff] %v1317_v6  ;;  %474 = vmatprep.mubr.f32.mxu0 %v1317_v6  ;;  %v390_v8 = vld [vmem:[%s1656_s2] sm:$0xff] }
  0x3b   : > { %s1318_s7 = smov 90   ;;  %1069 = vmatprep.mubr.msk.f32.mxu1 %vm1319_vm1, %v1317_v6  ;;  %1205 = vset.pattern.permute.xlu0 %v1320_v7  ;;  %vm275_vm2 = vcmask 1031168   ;;  %vm259_vm3 = vcmask 1039360   ;;  %vm267_vm4 = vcmask 261124   ;;  %vm290_vm5 = vcmask 900096   ;;  %s1321_s16 = smov 19  }
  0x3c   : > { %271 = vrot.lane.b32.xlu1 %v245_v2, %s1309_s11  ;;  %vm305_vm6 = vcmask 891904   ;;  %vm320_vm7 = vcmask 883712   ;;  %vm335_vm8 = vcmask 752640   ;;  %vm1662_vm9 = vcmask 744448   ;;  %p1675_p11 = scmp.ne.s32.totalorder %s1664_s29, 0  ;;  %s1322_s9 = smov [#allocation8]  }
  0x3d   : > { %286 = vrot.lane.b32.xlu0 %v241_v1, %s1311_s14  ;;  %1206 = vset.pattern.permute.xlu1 %v1320_v7  ;;  %vm1661_vm10 = vcmask 736256   ;;  %vm400_vm11 = vcmask 1043456   ;;  %vm396_vm12 = vcmask 293888   ;;  %s1244_s10 = sshll.u32 %s1322_s9, 4  ;;  %s1245_s10 = int_to_ptr.vmem [resolvable:$false] %s1244_s10 }
  0x40   : > { %288 = vrot.lane.b32.xlu1 %v252_v3, %s1311_s14 }
  0x41   : > { %257 = vrot.lane.b32.xlu0 %v252_v3, %s1310_s12 }
  0x44   : > { %269 = vrot.lane.b32.xlu1 %v241_v1, %s1309_s11 }
  0x45   : > { %253 = vrot.lane.b32.xlu0 %v251_v5, %s1310_s12 }
  0x48   : > { %301 = vrot.lane.b32.xlu1 %v245_v2, %s1313_s28 }
  0x49   : > { %284 = vrot.lane.b32.xlu0 %v251_v5, %s1311_s14 }
  0x4c   : > { %316 = vrot.lane.b32.xlu1 %v241_v1, %s1314_s15 }
  0x4d   : > { %303 = vrot.lane.b32.xlu0 %v242_v0, %s1313_s28 }
  0x50   : > { %331 = vrot.lane.b32.xlu1 %v245_v2, %s1315_s25 }
  0x51   : > { %318 = vrot.lane.b32.xlu0 %v252_v3, %s1314_s15 }
  0x54   : > { %346 = vrot.lane.b32.xlu1 %v241_v1, %s1316_s26 }
  0x55   : > { %333 = vrot.lane.b32.xlu0 %v242_v0, %s1315_s25 }
  0x58   : > { %299 = vrot.lane.b32.xlu1 %v241_v1, %s1313_s28 }
  0x59   : > { %348 = vrot.lane.b32.xlu0 %v252_v3, %s1316_s26  ;;  %v374_v3 = vld [vmem:[%s1655_s1] sm:$0xff] }
  0x5c   : > { %329 = vrot.lane.b32.xlu1 %v241_v1, %s1315_s25 }
  0x5d   : > { %314 = vrot.lane.b32.xlu0 %v251_v5, %s1314_s15 }
  0x60   : > { %361 = vrot.lane.b32.xlu1 %v245_v2, %s1318_s7 }
  0x61   : > { %344 = vrot.lane.b32.xlu0 %v251_v5, %s1316_s26 }
  0x64   : > { %359 = vrot.lane.b32.xlu1 %v241_v1, %s1318_s7 }
  0x65   : > { %363 = vrot.lane.b32.xlu0 %v242_v0, %s1318_s7 }
  0x69   : > { %393 = vperm.xlu0 %1205, %v390_v8  }
  0xaa   : > { %v274_v9 = vpop.permute.xlu1 %273 }
  0xab   : > { %v256_v10 = vpop.permute.xlu0 %255  ;;  %283 = vst.msk [vmem:[#allocation3 + $0x28] sm:$0xf] %vm249_vm0, %v274_v9 }
  0xae   : > { %v272_v12 = vpop.permute.xlu1 %271 }
  0xaf   : > { %v287_v11 = vpop.permute.xlu0 %286  ;;  %v277_v13 = vsel %vm275_vm2, %v272_v12, %v274_v9  ;;  %v554_v9 = vlaneseq }
  0xb0   : > { %282 = vst [vmem:[#allocation3 + $0x20] sm:$0xf] %v277_v13 }
  0xb2   : > { %v289_v15 = vpop.permute.xlu1 %288 }
  0xb3   : > { %v258_v14 = vpop.permute.xlu0 %257  ;;  %v292_v17 = vsel %vm290_vm5, %v287_v11, %v289_v15  ;;  %298 = vst.msk [vmem:[#allocation3 + $0x28] sm:$0xf0] %vm267_vm4, %v289_v15 }
  0xb4   : > { %v261_v16 = vsel %vm259_vm3, %v256_v10, %v258_v14  ;;  %268 = vst.msk [vmem:[#allocation3 + $0x10] sm:$0xf0] %vm267_vm4, %v258_v14  ;;  %297 = vst [vmem:[#allocation3 + $0x20] sm:$0xf0] %v292_v17 }
  0xb5   : > { %266 = vst [vmem:[#allocation3 + $0x8] sm:$0xf0] %v261_v16 }
  0xb6   : > { %v270_v19 = vpop.permute.xlu1 %269 }
  0xb7   : > { %v254_v18 = vpop.permute.xlu0 %253  ;;  %v276_v21 = vsel %vm275_vm2, %v270_v19, %v272_v12 }
  0xb8   : > { %v260_v20 = vsel %vm259_vm3, %v254_v18, %v256_v10  ;;  %281 = vst [vmem:[#allocation3 + $0x18] sm:$0xf] %v276_v21  ;;  %v555_v10 = vand.u32 127, %v554_v9 }
  0xb9   : > { %265 = vst [vmem:[#allocation3] sm:$0xf0] %v260_v20 }
  0xba   : > { %v302_v23 = vpop.permute.xlu1 %301  ;;  %v380_v25 = vld [vmem:[#allocation3 + $0x28] sm:$0xff]  ;;  %v1529_v14 = vmul.u32.u64.low 3817748708, %v555_v10  ;;  %v1530_v15 = vmul.u32.u64.high 3817748708, %v555_v10, %v1529_v14  ;;  %v556_v16 = vadd.s32 128, %v555_v10 }
  0xbb   : > { %v285_v22 = vpop.permute.xlu0 %284  ;;  %v377_v24 = vld [vmem:[#allocation3 + $0x10] sm:$0xff]  ;;  %v379_v29 = vld [vmem:[#allocation3 + $0x20] sm:$0xff] }
  0xbc   : > { %v291_v26 = vsel %vm290_vm5, %v285_v22, %v287_v11  ;;  %v1102_v27 = vpack.c.bf16 %v380_v25, %v377_v24  ;;  %v376_v28 = vld [vmem:[#allocation3 + $0x8] sm:$0xff]  ;;  %v557_v11 = vadd.s32 256, %v555_v10  ;;  %v564_v20 = vshrl.u32 %v1530_v15, 4 }
  0xbd   : > { %296 = vst [vmem:[#allocation3 + $0x18] sm:$0xf0] %v291_v26  ;;  %v1093_v30 = vpack.c.bf16 %v379_v29, %v376_v28  ;;  %v1532_v17 = vmul.u32.u64.low 3817748708, %v556_v16  ;;  %v1533_v18 = vmul.u32.u64.high 3817748708, %v556_v16, %v1532_v17 }
  0xbe   : > { %1103 = vmatpush3.bf16.msra.mxu1 %v1102_v27  ;;  %v317_v32 = vpop.permute.xlu1 %316  ;;  %v1526_v12 = vmul.u32.u64.low 3817748708, %v557_v11  ;;  %v1527_v13 = vmul.u32.u64.high 3817748708, %v557_v11, %v1526_v12  ;;  %v565_v22 = vmul.u32 18, %v564_v20 }
  0xbf   : > { %v304_v31 = vpop.permute.xlu0 %303  ;;  %1094 = vmatprep.subr.bf16.mxu0 %v1093_v30  ;;  %1104 = vmatprep.subr.bf16.mxu1 %v1312_v4 }
  0xc0   : > { %v307_v33 = vsel %vm305_vm6, %v302_v23, %v304_v31  ;;  %313 = vst.msk [vmem:[#allocation3 + $0x40] sm:$0xf] %vm249_vm0, %v304_v31  ;;  %v375_v37 = vld [vmem:[#allocation3] sm:$0xff]  ;;  %v586_v19 = vshrl.u32 %v1527_v13, 4  ;;  %v566_v25 = vsub.s32 %v555_v10, %v565_v22 }
  0xc1   : > { %312 = vst [vmem:[#allocation3 + $0x38] sm:$0xf] %v307_v33 }
  0xc2   : > { %v332_v35 = vpop.permute.xlu1 %331  ;;  %v587_v21 = vmul.u32 18, %v586_v19  ;;  %v600_v30 = vadd.s32 18, %v566_v25 }
  0xc3   : > { %v319_v34 = vpop.permute.xlu0 %318 }
  0xc4   : > { %v322_v36 = vsel %vm320_vm7, %v317_v32, %v319_v34  ;;  %328 = vst.msk [vmem:[#allocation3 + $0x40] sm:$0xf0] %vm267_vm4, %v319_v34  ;;  %v378_v38 = vld [vmem:[#allocation3 + $0x18] sm:$0xff]  ;;  %v588_v24 = vsub.s32 %v557_v11, %v587_v21 }
  0xc5   : > { %327 = vst [vmem:[#allocation3 + $0x38] sm:$0xf0] %v322_v36  ;;  %v1095_v39 = vpack.c.bf16 %v378_v38, %v375_v37 }
  0xc6   : > { %v347_v41 = vpop.permute.xlu1 %346  ;;  %vm593_vm13 = vcmp.ne.s32.totalorder %v588_v24, 0  ;;  %vm596_vm14 = vcmp.lt.s32.totalorder %v588_v24, 0  ;;  %v602_v27 = vadd.s32 18, %v588_v24 }
  0xc7   : > { %v334_v40 = vpop.permute.xlu0 %333  ;;  %1096 = vmatpush1.bf16.msra.mxu0 %v1095_v39  ;;  %vm599_vm15 = vmand %vm596_vm14, %vm593_vm13 }
  0xc8   : > { %v337_v42 = vsel %vm335_vm8, %v332_v35, %v334_v40  ;;  %343 = vst.msk [vmem:[#allocation3 + $0x58] sm:$0xf] %vm249_vm0, %v334_v40  ;;  %v605_v31 = vsel %vm599_vm15, %v602_v27, %v588_v24 }
  0xc9   : > { %342 = vst [vmem:[#allocation3 + $0x50] sm:$0xf] %v337_v42 }
  0xca   : > { %v300_v44 = vpop.permute.xlu1 %299 }
  0xcb   : > { %v349_v43 = vpop.permute.xlu0 %348  ;;  %v306_v46 = vsel %vm305_vm6, %v300_v44, %v302_v23  ;;  %v383_v53 = vld [vmem:[#allocation3 + $0x40] sm:$0xff]  ;;  %v575_v23 = vshrl.u32 %v1533_v18, 4 }
  0xcc   : > { %v352_v45 = vsel %vm1662_vm9, %v347_v41, %v349_v43  ;;  %358 = vst.msk [vmem:[#allocation3 + $0x58] sm:$0xf0] %vm267_vm4, %v349_v43  ;;  %311 = vst [vmem:[#allocation3 + $0x30] sm:$0xf] %v306_v46  ;;  %v382_v57 = vld [vmem:[#allocation3 + $0x38] sm:$0xff]  ;;  %vm614_vm4 = vcmask 572416  }
  0xcd   : > { %357 = vst [vmem:[#allocation3 + $0x50] sm:$0xf0] %v352_v45  ;;  %v576_v26 = vmul.u32 18, %v575_v23  ;;  %615 = vst.msk [vmem:[#allocation2 + $0x10] sm:$0xff] %vm614_vm4, %v1317_v6 }
  0xce   : > { %v330_v48 = vpop.permute.xlu1 %329 }
  0xcf   : > { %v315_v47 = vpop.permute.xlu0 %314  ;;  %v336_v50 = vsel %vm335_vm8, %v330_v48, %v332_v35  ;;  %v577_v28 = vsub.s32 %v556_v16, %v576_v26 }
  0xd0   : > { %v321_v49 = vsel %vm320_vm7, %v315_v47, %v317_v32  ;;  %341 = vst [vmem:[#allocation3 + $0x48] sm:$0xf] %v336_v50 }
  0xd1   : > { %326 = vst [vmem:[#allocation3 + $0x30] sm:$0xf0] %v321_v49  ;;  %v601_v37 = vadd.s32 18, %v577_v28 }
  0xd2   : > { %v362_v52 = vpop.permute.xlu1 %361 }
  0xd3   : > { %v345_v51 = vpop.permute.xlu0 %344  ;;  %v386_v54 = vld [vmem:[#allocation3 + $0x58] sm:$0xff] }
  0xd4   : > { %v351_v55 = vsel %vm1662_vm9, %v345_v51, %v347_v41  ;;  %v1105_v56 = vpack.c.bf16 %v386_v54, %v383_v53  ;;  %v385_v58 = vld [vmem:[#allocation3 + $0x50] sm:$0xff]  ;;  %vm608_vm9 = vcmp.lt.s32.totalorder %v605_v31, 16 }
  0xd5   : > { %356 = vst [vmem:[#allocation3 + $0x48] sm:$0xf0] %v351_v55  ;;  %v1097_v59 = vpack.c.bf16 %v385_v58, %v382_v57 }
  0xd6   : > { %1106 = vmatpush3.bf16.msra.mxu1 %v1105_v56  ;;  %v360_v61 = vpop.permute.xlu1 %359  ;;  %v786_v56 = vld [vmem:[%s1658_s4] sm:$0xff] }
  0xd7   : > { %v364_v60 = vpop.permute.xlu0 %363  ;;  %1098 = vmatprep.subr.bf16.mxu0 %v1097_v59  ;;  %1067 = vmatprep.subr.mxu1 %v1317_v6  ;;  %v366_v63 = vsel %vm1661_vm10, %v360_v61, %v362_v52 }
  0xd8   : > { %v367_v62 = vsel %vm1661_vm10, %v362_v52, %v364_v60  ;;  %373 = vst.msk [vmem:[#allocation3 + $0x70] sm:$0xf] %vm249_vm0, %v364_v60  ;;  %371 = vst [vmem:[#allocation3 + $0x60] sm:$0xf] %v366_v63  ;;  %v381_v0 = vld [vmem:[#allocation3 + $0x30] sm:$0xff]  ;;  %vm591_vm0 = vcmp.ne.s32.totalorder %v566_v25, 0 }
  0xd9   : > { %372 = vst [vmem:[#allocation3 + $0x68] sm:$0xf] %v367_v62  ;;  %vm595_vm10 = vcmp.lt.s32.totalorder %v577_v28, 0 }
  0xdc   : > { %v384_v1 = vld [vmem:[#allocation3 + $0x48] sm:$0xff] }
  0xdd   : > { %v1099_v2 = vpack.c.bf16 %v384_v1, %v381_v0 }
  0xdf   : > { %1100 = vmatpush1.bf16.msra.mxu0 %v1099_v2  ;;  %v389_v5 = vld [vmem:[#allocation3 + $0x70] sm:$0xf]  ;;  %v387_v8 = vld [vmem:[#allocation3 + $0x60] sm:$0xf] }
  0xe0   : > { %v388_v7 = vld [vmem:[#allocation3 + $0x68] sm:$0xf]  ;;  %1068 = vmatpush3.msk.msra.mxu1 %vm400_vm11, %v389_v5 }
  0xe1   : > { %1033 = vmatprep.subr.msk.mxu0 %vm400_vm11, %v388_v7  ;;  %1070 = vmatmul.mubr.msk.f32.vlgmr.msra.gmra.mrb[0].mxu1 %vm396_vm12, %v374_v3 }
  0xe2   : > { %1123 = vmatprep.subr.bf16.mxu1 %v1312_v4  ;;  %1090 = vmatprep.mubr.msk.f32.mxu1 %vm1319_vm1, %v1317_v6  ;;  %vm594_vm1 = vcmp.lt.s32.totalorder %v566_v25, 0 }
  0xe3   : > { %1034 = vmatpush1.msk.msra.mxu0 %vm400_vm11, %v387_v8  ;;  %vm1539_vm11 = vmand %vm594_vm1, %vm591_vm0  ;;  %vm631_vm0 = vcmask 1047704   ;;  %vm625_vm1 = vcmask 154624  }
  0xe4   : > { %1035 = vmatmul.mubr.msk.f32.vlgmr.msra.gmra.mrb[0].mxu0 %vm396_vm12, %v374_v3  ;;  %vm592_vm12 = vcmp.ne.s32.totalorder %v577_v28, 0  ;;  %v603_v36 = vsel %vm1539_vm11, %v600_v30, %v566_v25 }
  0xe5   : > { %860 = vmatprep.mubr.f32.mxu0 %v1317_v6  ;;  %vm598_vm13 = vmand %vm595_vm10, %vm592_vm12  ;;  %vm606_vm14 = vcmp.lt.s32.totalorder %v603_v36, 16  ;;  %vm634_vm10 = vcmask 416768  }
  0xe6   : > { %v604_v45 = vsel %vm598_vm13, %v601_v37, %v577_v28 }
  0xe7   : > { %vm607_vm15 = vcmp.lt.s32.totalorder %v604_v45, 16 }
  0xe8   : > { %v394_v29 = vpop.permute.xlu0 %393 }
 0x1b4   : > { %v547_v33 = vpop.f32.mrb[0].mxu1 }
 0x1b5   : > { %v548_v34 = vadd.f32 %v547_v33, %v394_v29  ;;  %v1071_v35 = vpop.f32.mrb[1].mxu1 }
 0x1b7   : > { %v476_v38 = vpop.f32.mrb[0].mxu0  ;;  %v553_v39 = vmax.f32 %v548_v34, 0.0 }
 0x1b8   : > { %v477_v40 = vadd.f32 %v476_v38, %v394_v29  ;;  %v478_v41 = vpop.f32.mrb[1].mxu0 }
 0x1b9   : > { %v479_v42 = vadd.f32 %v478_v41, %v394_v29  ;;  %v611_v43 = vsel %vm608_vm9, %v553_v39, 0.0  ;;  %vm641_vm9 = vcmask 261120  }
 0x1ba   : > { %v551_v44 = vmax.f32 %v477_v40, 0.0  ;;  %623 = vrot.lane.b32.xlu0 %v611_v43, %s1321_s16 }
 0x1bb   : > { %v552_v46 = vmax.f32 %v479_v42, 0.0 }
 0x1bc   : > { %v609_v47 = vsel %vm606_vm14, %v551_v44, 0.0 }
 0x1bd   : > { %619 = vrot.lane.b32.xlu1 %v609_v47, %s1321_s16  ;;  %v610_v48 = vsel %vm607_vm15, %v552_v46, 0.0 }
 0x1c1   : > { %621 = vrot.lane.b32.xlu1 %v610_v48, %s1321_s16  ;;  %s1246_s16 = scalar_lea.vmem %s1245_s10, 768 }
 0x22c   : > { %v624_v50 = vpop.permute.xlu0 %623 }
 0x22f   : > { %v620_v49 = vpop.permute.xlu1 %619 }
 0x230   : > { %632 = vst.msk [vmem:[#allocation2] sm:$0xff] %vm631_vm0, %v620_v49 }
 0x233   : > { %v622_v51 = vpop.permute.xlu1 %621 }
 0x234   : > { %v626_v52 = vsel %vm625_vm1, %v620_v49, %v622_v51  ;;  %v627_v53 = vsel %vm625_vm1, %v622_v51, %v624_v50 }
 0x235   : > { %635 = vst.msk [vmem:[#allocation2 + $0x10] sm:$0xff] %vm634_vm10, %v627_v53 }
 0x237   : > { %v636_v54 = vld [vmem:[#allocation2] sm:$0xff] }
 0x238   : > { %660 = vrot.lane.b32.xlu0 %v636_v54, %s1309_s11  ;;  %646 = vrot.lane.b32.xlu1 %v636_v54, %s1310_s12 }
 0x23c   : > { %688 = vrot.lane.b32.xlu0 %v636_v54, %s1313_s28  ;;  %674 = vrot.lane.b32.xlu1 %v636_v54, %s1311_s14  ;;  %v638_v55 = vld [vmem:[#allocation2 + $0x10] sm:$0xff] }
 0x23d   : > { %642 = vst.msk [vmem:[#allocation4 + $0x10] sm:$0xff] %vm641_vm9, %v638_v55 }
 0x240   : > { %716 = vrot.lane.b32.xlu0 %v636_v54, %s1315_s25  ;;  %702 = vrot.lane.b32.xlu1 %v636_v54, %s1314_s15 }
 0x244   : > { %650 = vrot.lane.b32.xlu0 %v638_v55, %s1310_s12  ;;  %648 = vrot.lane.b32.xlu1 %v626_v52, %s1310_s12  ;;  %v761_v13 = vld [vmem:[#allocation4 + $0x10] sm:$0xff] }
 0x248   : > { %662 = vrot.lane.b32.xlu0 %v626_v52, %s1309_s11  ;;  %664 = vrot.lane.b32.xlu1 %v638_v55, %s1309_s11 }
 0x24c   : > { %676 = vrot.lane.b32.xlu0 %v626_v52, %s1311_s14  ;;  %678 = vrot.lane.b32.xlu1 %v638_v55, %s1311_s14  ;;  %s1138_s14 = smul.u32 24, %s1452_s13 }
 0x250   : > { %690 = vrot.lane.b32.xlu0 %v626_v52, %s1313_s28  ;;  %692 = vrot.lane.b32.xlu1 %v638_v55, %s1313_s28  ;;  %s1145_s28 = smul.u32 384, %s1374_s22  ;;  %s944_s22 = scalar_lea.sflag [#allocation7], %s1452_s13 }
 0x252   : > { %s1609_s6 = scalar_lea.hbm %s1659_s5, %s1145_s28 }
 0x254   : > { %704 = vrot.lane.b32.xlu0 %v626_v52, %s1314_s15  ;;  %706 = vrot.lane.b32.xlu1 %v638_v55, %s1314_s15  ;;  %s240_s15 = scalar_lea.vmem [#allocation8], %s1138_s14 }
 0x258   : > { %718 = vrot.lane.b32.xlu0 %v626_v52, %s1315_s25  ;;  %720 = vrot.lane.b32.xlu1 %v638_v55, %s1315_s25  ;;  %s958_s25 = sshll.u32 %s240_s15, 4  ;;  %s1611_s25 = int_to_ptr.vmem [resolvable:$true] %s958_s25 }
 0x259   : > { %s1240_s8 = scalar_lea.vmem %s1611_s25, 384  ;;  %p1247_p5 = scmp.lt.s32.totalorder %s1611_s25, %s1245_s10 }
 0x25a   : > { %p1241_p6 = scmp.ne.s32.totalorder %s1611_s25, %s1240_s8  ;;  %p1248_p10 = scmp.lt.s32.totalorder %s1246_s16, %s1240_s8 }
 0x25c   : > { %732 = vrot.lane.b32.xlu0 %v626_v52, %s1316_s26  ;;  %734 = vrot.lane.b32.xlu1 %v638_v55, %s1316_s26  ;;  %p1242_p12 = pnand %p1241_p6, %p1675_p11  ;;  %p1249_p2 = por %p1248_p10, %p1247_p5 }
 0x25e   : > { %p1243_p13 = pneg %p1242_p12 }
 0x260   : > { %746 = vrot.lane.b32.xlu0 %v626_v52, %s1318_s7  ;;  %730 = vrot.lane.b32.xlu1 %v636_v54, %s1316_s26  ;;  %p1250_p4 = pnand %p1249_p2, %p1243_p13 }
 0x264   : > { %744 = vrot.lane.b32.xlu0 %v636_v54, %s1318_s7  ;;  %748 = vrot.lane.b32.xlu1 %v638_v55, %s1318_s7 }
 0x268   : > { %789 = vperm.xlu1 %1206, %v786_v56  }
 0x2aa   : > { %v661_v57 = vpop.permute.xlu0 %660  ;;  %v647_v58 = vpop.permute.xlu1 %646 }
 0x2ae   : > { %v689_v59 = vpop.permute.xlu0 %688  ;;  %v675_v60 = vpop.permute.xlu1 %674 }
 0x2b2   : > { %v717_v61 = vpop.permute.xlu0 %716  ;;  %v703_v62 = vpop.permute.xlu1 %702 }
 0x2b6   : > { %v651_v63 = vpop.permute.xlu0 %650  ;;  %v649_v0 = vpop.permute.xlu1 %648 }
 0x2b7   : > { %659 = vst.msk [vmem:[#allocation4 + $0x28] sm:$0xff] %vm641_vm9, %v651_v63  ;;  %v652_v1 = vsel %vm259_vm3, %v647_v58, %v649_v0  ;;  %v653_v2 = vsel %vm259_vm3, %v649_v0, %v651_v63 }
 0x2b8   : > { %v1107_v3 = vpack.c.bf16 %v653_v2, %v626_v52  ;;  %v1109_v5 = vpack.c.bf16 %v652_v1, %v636_v54 }
 0x2ba   : > { %v663_v7 = vpop.permute.xlu0 %662  ;;  %v665_v8 = vpop.permute.xlu1 %664  ;;  %1108 = vmatprep.subr.bf16.mxu0 %v1107_v3 }
 0x2bb   : > { %v666_v9 = vsel %vm275_vm2, %v661_v57, %v663_v7  ;;  %v667_v10 = vsel %vm275_vm2, %v663_v7, %v665_v8  ;;  %673 = vst.msk [vmem:[#allocation4 + $0x40] sm:$0xff] %vm641_vm9, %v665_v8  ;;  %1110 = vmatpush1.bf16.msra.mxu0 %v1109_v5  ;;  %vm1671_vm2 = vcmask 744448  }
 0x2bc   : > { %vm1672_vm3 = vmmov %vm1671_vm2 }
 0x2be   : > { %v677_v11 = vpop.permute.xlu0 %676  ;;  %v679_v12 = vpop.permute.xlu1 %678  ;;  %v764_v14 = vld [vmem:[#allocation4 + $0x28] sm:$0xff] }
 0x2bf   : > { %v680_v15 = vsel %vm290_vm5, %v675_v60, %v677_v11  ;;  %v681_v16 = vsel %vm290_vm5, %v677_v11, %v679_v12  ;;  %687 = vst.msk [vmem:[#allocation4 + $0x58] sm:$0xff] %vm641_vm9, %v679_v12  ;;  %v1124_v17 = vpack.c.bf16 %v764_v14, %v761_v13  ;;  %vm1673_vm5 = vcmask 736256  }
 0x2c0   : > { %v1111_v18 = vpack.c.bf16 %v681_v16, %v667_v10  ;;  %v1113_v19 = vpack.c.bf16 %v680_v15, %v666_v9 }
 0x2c1   : > { %1125 = vmatpush3.bf16.msra.mxu1 %v1124_v17 }
 0x2c2   : > { %v691_v20 = vpop.permute.xlu0 %690  ;;  %v693_v21 = vpop.permute.xlu1 %692  ;;  %1126 = vmatprep.subr.bf16.mxu1 %v1312_v4  ;;  %1112 = vmatprep.subr.bf16.mxu0 %v1111_v18  ;;  %v767_v26 = vld [vmem:[#allocation4 + $0x40] sm:$0xff] }
 0x2c3   : > { %v694_v22 = vsel %vm305_vm6, %v689_v59, %v691_v20  ;;  %v695_v23 = vsel %vm305_vm6, %v691_v20, %v693_v21  ;;  %701 = vst.msk [vmem:[#allocation4 + $0x70] sm:$0xff] %vm641_vm9, %v693_v21  ;;  %1114 = vmatpush1.bf16.msra.mxu0 %v1113_v19  ;;  %vm1674_vm6 = vmmov %vm1673_vm5 }
 0x2c6   : > { %v705_v24 = vpop.permute.xlu0 %704  ;;  %v707_v25 = vpop.permute.xlu1 %706  ;;  %v770_v27 = vld [vmem:[#allocation4 + $0x58] sm:$0xff] }
 0x2c7   : > { %v708_v28 = vsel %vm320_vm7, %v703_v62, %v705_v24  ;;  %v709_v29 = vsel %vm320_vm7, %v705_v24, %v707_v25  ;;  %715 = vst.msk [vmem:[#allocation4 + $0x88] sm:$0xff] %vm641_vm9, %v707_v25  ;;  %v1127_v30 = vpack.c.bf16 %v770_v27, %v767_v26  ;;  %vm792_vm7 = vcmask 588800  }
 0x2c8   : > { %v1115_v31 = vpack.c.bf16 %v709_v29, %v695_v23  ;;  %v1117_v32 = vpack.c.bf16 %v708_v28, %v694_v22 }
 0x2c9   : > { %1128 = vmatpush3.bf16.msra.mxu1 %v1127_v30 }
 0x2ca   : > { %v719_v33 = vpop.permute.xlu0 %718  ;;  %v721_v34 = vpop.permute.xlu1 %720  ;;  %1129 = vmatprep.subr.bf16.mxu1 %v1312_v4  ;;  %1116 = vmatprep.subr.bf16.mxu0 %v1115_v31  ;;  %v773_v39 = vld [vmem:[#allocation4 + $0x70] sm:$0xff] }
 0x2cb   : > { %v722_v35 = vsel %vm335_vm8, %v717_v61, %v719_v33  ;;  %v723_v36 = vsel %vm335_vm8, %v719_v33, %v721_v34  ;;  %729 = vst.msk [vmem:[#allocation4 + $0xa0] sm:$0xff] %vm641_vm9, %v721_v34  ;;  %1118 = vmatpush1.bf16.msra.mxu0 %v1117_v32 }
 0x2ce   : > { %v733_v37 = vpop.permute.xlu0 %732  ;;  %v735_v38 = vpop.permute.xlu1 %734  ;;  %v776_v40 = vld [vmem:[#allocation4 + $0x88] sm:$0xff] }
 0x2cf   : > { %v737_v41 = vsel %vm1671_vm2, %v733_v37, %v735_v38  ;;  %743 = vst.msk [vmem:[#allocation4 + $0xb8] sm:$0xff] %vm641_vm9, %v735_v38  ;;  %v1130_v42 = vpack.c.bf16 %v776_v40, %v773_v39 }
 0x2d0   : > { %v1119_v43 = vpack.c.bf16 %v737_v41, %v723_v36 }
 0x2d1   : > { %1131 = vmatpush3.bf16.msra.mxu1 %v1130_v42 }
 0x2d2   : > { %v747_v44 = vpop.permute.xlu0 %746  ;;  %v731_v45 = vpop.permute.xlu1 %730  ;;  %1132 = vmatprep.subr.bf16.mxu1 %v1312_v4  ;;  %1120 = vmatprep.subr.bf16.mxu0 %v1119_v43  ;;  %v779_v50 = vld [vmem:[#allocation4 + $0xa0] sm:$0xff]  ;;  %v758_v4 = vld [vmem:[%s1657_s3] sm:$0xff] }
 0x2d3   : > { %v736_v46 = vsel %vm1672_vm3, %v731_v45, %v733_v37 }
 0x2d4   : > { %v1121_v47 = vpack.c.bf16 %v736_v46, %v722_v35 }
 0x2d6   : > { %v745_v48 = vpop.permute.xlu0 %744  ;;  %v749_v49 = vpop.permute.xlu1 %748  ;;  %v782_v51 = vld [vmem:[#allocation4 + $0xb8] sm:$0xff]  ;;  %1122 = vmatpush1.bf16.msra.mxu0 %v1121_v47 }
 0x2d7   : > { %v750_v52 = vsel %vm1673_vm5, %v745_v48, %v747_v44  ;;  %v751_v53 = vsel %vm1674_vm6, %v747_v44, %v749_v49  ;;  %757 = vst.msk [vmem:[#allocation4 + $0xd0] sm:$0xff] %vm641_vm9, %v749_v49  ;;  %v1133_v54 = vpack.c.bf16 %v782_v51, %v779_v50 }
 0x2d8   : > { %812 = vmatprep.subr.mxu0 %v751_v53 }
 0x2d9   : > { %1134 = vmatpush3.bf16.msra.mxu1 %v1133_v54 }
 0x2da   : > { %1088 = vmatprep.subr.mxu1 %v1317_v6  ;;  %813 = vmatpush1.msra.mxu0 %v750_v52 }
 0x2db   : > { %1038 = vmatmul.mubr.msk.f32.vlgmr.msra.gmra.mrb[2].mxu0 %vm792_vm7, %v758_v4 }
 0x2de   : > { %v785_v55 = vld [vmem:[#allocation4 + $0xd0] sm:$0xff] }
 0x2df   : > { %1089 = vmatpush3.msra.mxu1 %v785_v55 }
 0x2e0   : > { %1091 = vmatmul.mubr.msk.f32.vlgmr.msra.gmra.mrb[2].mxu1 %vm792_vm7, %v758_v4 }
 0x2e7   : > { %v790_v56 = vpop.permute.xlu1 %789 }
 0x3ae   : > { %v862_v57 = vpop.f32.mrb[2].mxu0 }
 0x3af   : > { %v863_v58 = vadd.f32 %v862_v57, %v790_v56  ;;  %v864_v59 = vpop.f32.mrb[3].mxu0 }
 0x3b0   : > { %v865_v60 = vadd.f32 %v864_v59, %v790_v56 }
 0x3b1   : > { %v937_v61 = vmax.f32 %v863_v58, 0.0 }
 0x3b2   : > { %v938_v62 = vmax.f32 %v865_v60, 0.0 }
 0x3b3   : > { %v933_v63 = vpop.f32.mrb[2].mxu1  ;;  %940 = vst [vmem:[%s240_s15] sm:$0xff] %v937_v61 }
 0x3b4   : > { %v934_v6 = vadd.f32 %v933_v63, %v790_v56  ;;  %941 = vst [vmem:[%s240_s15 + $0x8] sm:$0xff] %v938_v62  ;;  %v1092_v0 = vpop.f32.mrb[3].mxu1 }
 0x3b6   : > { %v939_v1 = vmax.f32 %v934_v6, 0.0 }
 0x3b8   : > { %942 = vst.msk [vmem:[%s240_s15 + $0x10] sm:$0xff] %vm641_vm9, %v939_v1 }
 0x3b9   : > { %1253 = shalt.err (!%p1250_p4)
}
 0x3ba   : > { %s1254_s13 = scalar_lea.hbm %s1609_s6, 384  ;;  %s1258_s11 = scalar_lea.hbm %s1659_s5, 768 }
 0x3bb   : > { %p1255_p7 = scmp.ne.s32.totalorder %s1609_s6, %s1254_s13  ;;  %p1259_p0 = scmp.lt.u32.totalorder %s1609_s6, %s1659_s5 }
 0x3bc   : > { %p1260_p1 = scmp.lt.u32.totalorder %s1258_s11, %s1254_s13  ;;  %p1262_p6 = scmp.lt.u32.totalorder %s1254_s13, %s1609_s6 }
 0x3bd   : > { %p1256_p8 = pnand %p1255_p7, %p1675_p11 }
 0x3be   : > { %p1261_p3 = por %p1260_p1, %p1259_p0 }
 0x3bf   : > { %p1257_p9 = pneg %p1256_p8 }
 0x3c0   : > { %p1263_p12 = por %p1262_p6, %p1261_p3 }
 0x3c2   : > { %p1264_p13 = pnand %p1263_p12, %p1257_p9 }
 0x3c4   : > { %1267 = shalt.err (!%p1264_p13)
}
 0x3c5   : > { %1148 = dma.vmem_to_hbm [thread:$0]  (%p1675_p11), %s1611_s25, 384, %s1609_s6, %s944_s22  }
 0x3c6 PF: > { %s970_s28 = sand.u32 1, %s1294_s18   ;;  %p1676_p5 = scmp.ne.s32.totalorder %s1665_s30, 0 }
 0x3c7   : > { %p1677_p10 = scmp.ge.s32.totalorder %s1306_s21, 2  ;;  %s971_s15 = scalar_lea.sflag [#allocation7], %s970_s28 }
 0x3c9   : > { %p1155_p2 = pnand %p1677_p10, %p1676_p5 }
 0x3cb   : > { %1289 = dma.done.wait (!%p1155_p2), %s971_s15, 384  }
 0x3cc   : > { %1291 = vsyncadd (!%p1155_p2), %s971_s15, 4294966912  ;;  %p18_p4 = scmp.ge.s32.totalorder %s1378_s24, 4   ;;  %s1678_s18 = smov %s1298_s19 }
 0x3cd   : > { %s1679_s19 = smov %s1302_s20  ;;  %s1680_s20 = smov %s1390_s27 }
 0x3ce   : > { %s1681_s21 = smov %s1378_s24  ;;  %20 = sbr.rel (!%p18_p4) target bundleno = 5 (0x5), region = 85 }
 0x3d5   :  { %976 = vsyncpa [#allocation6], 1 }
 0x3d6   :  { %978 = vsyncpa [#allocation6 + $0x1], 1 }
 0x3d7   :  { %979 = vsyncpa [#allocation7], 1 }
 0x3d8   :  { %981 = vsyncpa [#allocation7 + $0x1], 1 }

</bundles_post_ra>
